<compile_context>
chip_gen: v7x
topology: tpu7x:2x2x1
jax: 0.10.0
libtpu: 0.0.40
codegen_flags: <defaults>
</compile_context>

<pallas_src>
import functools
import math

import numpy as np

import jax
import jax.numpy as jnp
from jax.experimental import pallas as pl
from jax.experimental.pallas import tpu as pltpu

EPS = 1e-5


# ----------------------------- in-kernel helpers ----------------------------- #

def _conv_lhs(xm, Ho, stride):
    """Build the banded-matmul LHS from a lane-dense (B, Hin, W*C) value.

    Height padding = concat of one zero row top/bottom (in registers, no scratch
    round-trip); the three kh row-shifted (and height-strided) views are concatenated
    on the lane dim.  Width padding / width stride live in the banded weight.
    Returns (B*Ho, 3*W*C).
    """
    B, Hin, WC = xm.shape
    zrow = jnp.zeros((B, 1, WC), xm.dtype)
    xph = jnp.concatenate([zrow, xm, zrow], axis=1)           # (B, Hin+2, W*C)

    def rows(kh):
        if stride == 1:
            return xph[:, kh:kh + Ho, :]
        return jax.lax.slice_in_dim(xph, kh, kh + (Ho - 1) * stride + 1, stride, axis=1)

    lhs = jnp.concatenate([rows(0), rows(1), rows(2)], axis=-1)   # (B, Ho, 3*W*C)
    return lhs.reshape(B * Ho, 3 * WC)                            # merge leading dims only


def _bn_train(acc, g, bt, gsel, gselt, npix):
    """Train-mode BatchNorm of a lane-dense (rows, Wo*Cout) f32 accumulator.

    Per-channel sums are gathered from the merged (wo, c) lane dim with one tiny
    selection matmul (gsel: (Wo*Cout, Cout)); per-channel scale/shift are broadcast
    back with gselt so the normalize stays a lane-dense FMA.  Stats are f32 one-pass
    (E[x^2]-E[x]^2): fine for O(1) activations; do not combine with bf16 accumulation.
    """
    inv_n = jnp.float32(1.0 / npix)
    cols = jnp.concatenate(
        [jnp.sum(acc, axis=0, keepdims=True),
         jnp.sum(acc * acc, axis=0, keepdims=True)], axis=0)          # (2, Wo*Cout)
    sums = jnp.dot(cols, gsel, preferred_element_type=jnp.float32) * inv_n   # (2, Cout)
    mean = sums[0:1]
    var = sums[1:2] - mean * mean
    scale = g * jax.lax.rsqrt(var + EPS)
    shift = bt - mean * scale
    ss = jnp.dot(jnp.concatenate([scale, shift], axis=0), gselt,
                 preferred_element_type=jnp.float32)                  # (2, Wo*Cout)
    return acc * ss[0:1] + ss[1:2]


# --------------------------------- kernel ------------------------------------ #

def residual_kernel(x_ref, wb1_ref, wb2_ref, g1_ref, bt1_ref, g2_ref, bt2_ref,
                    gsel_ref, gselt_ref, *rest, stride, use_conv, matmul_dtype):
    if use_conv:
        b3_ref, o_ref = rest
    else:
        (o_ref,) = rest
        b3_ref = None

    B, H, _ = x_ref.shape
    _, Ho, Nout = o_ref.shape            # Nout = Wo*Cout (lane-dense)
    Cout = gsel_ref.shape[1]
    Wo = Nout // Cout
    npix = B * Ho * Wo

    x = x_ref[...]                       # (B, H, W*Cin) f32

    # ---- stage 1: conv1 (+ fused 1x1 skip columns) as ONE banded matmul + BN + ReLU.
    lhs1 = _conv_lhs(x.astype(matmul_dtype), Ho, stride)              # (B*Ho, 3*W*Cin)
    acc1 = jnp.dot(lhs1, wb1_ref[...], preferred_element_type=jnp.float32)
    if use_conv:
        y1pre = acc1[:, :Nout]
        skip = acc1[:, Nout:] + b3_ref[...]                           # 1x1-conv skip + bias
    else:
        y1pre = acc1
        skip = x.reshape(B * Ho, Nout)                                # identity (stride==1)
    y1 = jnp.maximum(
        _bn_train(y1pre, g1_ref[...], bt1_ref[...], gsel_ref[...], gselt_ref[...], npix),
        0.0)

    # ---- stage 2: conv2 banded matmul + BN (y1 never leaves registers/VMEM values).
    lhs2 = _conv_lhs(y1.reshape(B, Ho, Nout).astype(matmul_dtype), Ho, 1)
    acc2 = jnp.dot(lhs2, wb2_ref[...], preferred_element_type=jnp.float32)
    y2 = _bn_train(acc2, g2_ref[...], bt2_ref[...], gsel_ref[...], gselt_ref[...], npix)

    out = jnp.maximum(y2 + skip, 0.0)
    o_ref[...] = out.reshape(B, Ho, Nout).astype(o_ref.dtype)         # lane-dense store


# --------------------------- wrapper / weight prep ---------------------------- #

def _band_placement(w_in, wo_n, stride):
    """P[kw, wp, wo] = 1 iff wp == wo*stride + kw - 1 and 0 <= wp < w_in (host constant)."""
    P = np.zeros((3, w_in, wo_n), np.float32)
    for kw in range(3):
        for wo in range(wo_n):
            wp = wo * stride + kw - 1
            if 0 <= wp < w_in:
                P[kw, wp, wo] = 1.0
    return P


def _banded_conv_weight(w, w_in, wo_n, stride):
    """(3,3,Cin,Cout) conv weight -> banded (3*w_in*Cin, wo_n*Cout) matmul weight.

    Rows ordered (kh, wp, cin) to match _conv_lhs; cols ordered (wo, cout) = lane-dense.
    Width padding + width stride are folded in here.
    """
    cin, cout = w.shape[2], w.shape[3]
    P = jnp.asarray(_band_placement(w_in, wo_n, stride))
    Wb = jnp.einsum('kpw,hkio->hpiwo', P, w)
    return Wb.reshape(3 * w_in * cin, wo_n * cout)


def _banded_skip_weight(w3, w_in, wo_n, stride):
    """1x1 stride-s skip conv as extra banded output columns on the conv1 kh==1 block."""
    cin, cout = w3.shape
    S = np.zeros((w_in, wo_n), np.float32)
    for wo in range(wo_n):
        S[wo * stride, wo] = 1.0
    blk = jnp.einsum('pw,io->piwo', jnp.asarray(S), w3).reshape(w_in * cin, wo_n * cout)
    z = jnp.zeros((w_in * cin, wo_n * cout), w3.dtype)
    return jnp.concatenate([z, blk, z], axis=0)                       # (3*w_in*cin, wo_n*cout)


def _full_spec(a):
    zeros = (0,) * a.ndim
    return pl.BlockSpec(a.shape, lambda i: zeros)


@functools.partial(jax.jit, static_argnames=("use_conv", "strides", "matmul_dtype"))
def residual_forward(x_nchw, params, *, use_conv, strides, matmul_dtype=jnp.bfloat16):
    B, Cin, H, W = x_nchw.shape
    Cout = params["w1"].shape[-1]
    Ho = (H - 1) // strides + 1
    Wo = (W - 1) // strides + 1
    if not use_conv:
        # PyTorch's `Y += X` requires matching shapes for the identity skip.
        assert strides == 1 and Cin == Cout, "identity skip requires stride==1, Cin==Cout"

    # NCHW -> lane-dense (B, H, W*Cin).  Transposes stay in the wrapper (tiny tensors).
    x_m = jnp.transpose(x_nchw, (0, 2, 3, 1)).reshape(B, H, W * Cin).astype(jnp.float32)

    wb1 = _banded_conv_weight(params["w1"], W, Wo, strides)
    if use_conv:
        wb1 = jnp.concatenate([wb1, _banded_skip_weight(params["w3"], W, Wo, strides)],
                              axis=1)                                 # fused skip columns
    wb2 = _banded_conv_weight(params["w2"], Wo, Wo, 1)

    gsel = jnp.tile(jnp.eye(Cout, dtype=jnp.float32), (Wo, 1))        # (Wo*Cout, Cout)
    gselt = gsel.T                                                    # (Cout, Wo*Cout)

    args = [x_m, wb1.astype(matmul_dtype), wb2.astype(matmul_dtype),
            params["g1"], params["bt1"], params["g2"], params["bt2"], gsel, gselt]
    if use_conv:
        args.append(jnp.tile(params["b3"].astype(jnp.float32), (1, Wo)))   # (1, Wo*Cout)

    kernel = functools.partial(residual_kernel, stride=strides, use_conv=use_conv,
                               matmul_dtype=matmul_dtype)

    out = pl.pallas_call(
        kernel,
        grid=(1,),
        in_specs=[_full_spec(a) for a in args],
        out_specs=pl.BlockSpec((B, Ho, Wo * Cout), lambda i: (0, 0, 0)),
        out_shape=jax.ShapeDtypeStruct((B, Ho, Wo * Cout), jnp.float32),
        compiler_params=pltpu.CompilerParams(dimension_semantics=("arbitrary",)),
    )(*args)

    # lane-dense (B, Ho, Wo*Cout) -> NCHW (layout plumbing outside the kernel).
    return jnp.transpose(out.reshape(B, Ho, Wo, Cout), (0, 3, 1, 2))


# ----------------------------- reference (plain JAX) -------------------------- #

def _bn_ref(y, g, bt):
    mean = jnp.mean(y, axis=(0, 2, 3), keepdims=True)
    var = jnp.mean((y - mean) ** 2, axis=(0, 2, 3), keepdims=True)
    return (y - mean) * jax.lax.rsqrt(var + EPS) * g.reshape(1, -1, 1, 1) + bt.reshape(1, -1, 1, 1)


def residual_reference(x_nchw, params, *, use_conv, strides):
    def conv(x, w_khkwio, b, stride, pad):
        w_oihw = jnp.transpose(w_khkwio, (3, 2, 0, 1))
        y = jax.lax.conv_general_dilated(
            x, w_oihw, (stride, stride), [(pad, pad), (pad, pad)],
            dimension_numbers=("NCHW", "OIHW", "NCHW"),
            precision=jax.lax.Precision.HIGHEST)
        return y + b.reshape(1, -1, 1, 1)

    # NOTE: the reference keeps conv biases b1/b2 (as PyTorch does); the kernel drops
    # them because train-mode BN cancels them exactly — matching outputs verify this.
    y = jax.nn.relu(_bn_ref(conv(x_nchw, params["w1"], params["b1"].ravel(), strides, 1),
                            params["g1"].ravel(), params["bt1"].ravel()))
    y = _bn_ref(conv(y, params["w2"], params["b2"].ravel(), 1, 1),
                params["g2"].ravel(), params["bt2"].ravel())
    skip = x_nchw
    if use_conv:
        w3 = params["w3"].reshape(1, 1, *params["w3"].shape)          # (1,1,Cin,Cout)
        skip = conv(x_nchw, w3, params["b3"].ravel(), strides, 0)
    return jax.nn.relu(y + skip)


# ----------------------------------- main -------------------------------------- #

def init_params(key, cin, cout):
    ks = jax.random.split(key, 3)

    def conv_w(k, kh, kw, ci, co):
        bound = 1.0 / math.sqrt(ci * kh * kw)
        kw_, kb_ = jax.random.split(k)
        w = jax.random.uniform(kw_, (kh, kw, ci, co), jnp.float32, -bound, bound)
        b = jax.random.uniform(kb_, (1, co), jnp.float32, -bound, bound)
        return w, b

    w1, b1 = conv_w(ks[0], 3, 3, cin, cout)
    w2, b2 = conv_w(ks[1], 3, 3, cout, cout)
    w3_full, b3 = conv_w(ks[2], 1, 1, cin, cout)
    return dict(
        w1=w1, b1=b1, g1=jnp.ones((1, cout), jnp.float32), bt1=jnp.zeros((1, cout), jnp.float32),
        w2=w2, b2=b2, g2=jnp.ones((1, cout), jnp.float32), bt2=jnp.zeros((1, cout), jnp.float32),
        w3=w3_full[0, 0], b3=b3,   # 1x1 conv as (Cin, Cout) matmul weight
    )


if __name__ == "__main__":
    key = jax.random.PRNGKey(0)

    # config 1: 1x1-conv skip (Cin != Cout);  config 2: identity skip (Cin == Cout)
    configs = [
        dict(B=2, Cin=4, Cout=8, H=16, W=16, use_conv=True, strides=1),
        dict(B=2, Cin=8, Cout=8, H=16, W=16, use_conv=False, strides=1),
    ]
    for cfg in configs:
        key, kx, kp = jax.random.split(key, 3)
        x = jax.random.normal(kx, (cfg["B"], cfg["Cin"], cfg["H"], cfg["W"]), jnp.float32)
        params = init_params(kp, cfg["Cin"], cfg["Cout"])

        out = residual_forward(x, params, use_conv=cfg["use_conv"], strides=cfg["strides"])
        out = jax.block_until_ready(out)

        ref = residual_reference(x, params, use_conv=cfg["use_conv"], strides=cfg["strides"])
        assert out.shape == ref.shape == (cfg["B"], cfg["Cout"], cfg["H"], cfg["W"])
        assert bool(jnp.all(jnp.isfinite(out)))
        max_err = float(jnp.max(jnp.abs(out - ref)))
        assert max_err < 5e-2, f"mismatch vs reference: {max_err}"

    print("KERNEL_OK")
</pallas_src>

<mosaic_0001>
module attributes {stable_mosaic.version = 11 : i64} {
  func.func @residual_kernel(%arg0: i32, %arg1: memref<2x16x64xf32, #tpu.memory_space<vmem>>, %arg2: memref<192x256xbf16, #tpu.memory_space<vmem>>, %arg3: memref<384x128xbf16, #tpu.memory_space<vmem>>, %arg4: memref<1x8xf32, #tpu.memory_space<vmem>>, %arg5: memref<1x8xf32, #tpu.memory_space<vmem>>, %arg6: memref<1x8xf32, #tpu.memory_space<vmem>>, %arg7: memref<1x8xf32, #tpu.memory_space<vmem>>, %arg8: memref<128x8xf32, #tpu.memory_space<vmem>>, %arg9: memref<8x128xf32, #tpu.memory_space<vmem>>, %arg10: memref<1x128xf32, #tpu.memory_space<vmem>>, %arg11: memref<2x16x128xf32, #tpu.memory_space<vmem>>) attributes {dimension_semantics = [#tpu.dimension_semantics<arbitrary>], iteration_bounds = array<i64: 1>, scalar_prefetch = 0 : i64, scratch_operands = 0 : i64, tpu.core_type = #tpu.core_type<tc>, window_params = [{pipeline_mode = #tpu.pipeline_mode<synchronous>, transform_indices = @transform_0, window_bounds = array<i64: 2, 16, 64>}, {pipeline_mode = #tpu.pipeline_mode<synchronous>, transform_indices = @transform_1, window_bounds = array<i64: 192, 256>}, {pipeline_mode = #tpu.pipeline_mode<synchronous>, transform_indices = @transform_2, window_bounds = array<i64: 384, 128>}, {pipeline_mode = #tpu.pipeline_mode<synchronous>, transform_indices = @transform_3, window_bounds = array<i64: 1, 8>}, {pipeline_mode = #tpu.pipeline_mode<synchronous>, transform_indices = @transform_4, window_bounds = array<i64: 1, 8>}, {pipeline_mode = #tpu.pipeline_mode<synchronous>, transform_indices = @transform_5, window_bounds = array<i64: 1, 8>}, {pipeline_mode = #tpu.pipeline_mode<synchronous>, transform_indices = @transform_6, window_bounds = array<i64: 1, 8>}, {pipeline_mode = #tpu.pipeline_mode<synchronous>, transform_indices = @transform_7, window_bounds = array<i64: 128, 8>}, {pipeline_mode = #tpu.pipeline_mode<synchronous>, transform_indices = @transform_8, window_bounds = array<i64: 8, 128>}, {pipeline_mode = #tpu.pipeline_mode<synchronous>, transform_indices = @transform_9, window_bounds = array<i64: 1, 128>}, {pipeline_mode = #tpu.pipeline_mode<synchronous>, transform_indices = @transform_10, window_bounds = array<i64: 2, 16, 128>}]} {
    %c0 = arith.constant 0 : index
    %c0_0 = arith.constant 0 : index
    %c0_1 = arith.constant 0 : index
    %0 = vector.load %arg1[%c0, %c0_0, %c0_1] : memref<2x16x64xf32, #tpu.memory_space<vmem>>, vector<2x16x64xf32>
    %1 = arith.truncf %0 : vector<2x16x64xf32> to vector<2x16x64xbf16>
    %cst = arith.constant 0.000000e+00 : bf16
    %2 = vector.broadcast %cst : bf16 to vector<2x1x64xbf16>
    %3 = tpu.concatenate %2, %1, %2 in 1 : vector<2x1x64xbf16>, vector<2x16x64xbf16>, vector<2x1x64xbf16> -> vector<2x18x64xbf16>
    %4 = vector.extract_strided_slice %3 {offsets = [0, 0, 0], sizes = [2, 16, 64], strides = [1, 1, 1]} : vector<2x18x64xbf16> to vector<2x16x64xbf16>
    %5 = vector.extract_strided_slice %3 {offsets = [0, 1, 0], sizes = [2, 16, 64], strides = [1, 1, 1]} : vector<2x18x64xbf16> to vector<2x16x64xbf16>
    %6 = vector.extract_strided_slice %3 {offsets = [0, 2, 0], sizes = [2, 16, 64], strides = [1, 1, 1]} : vector<2x18x64xbf16> to vector<2x16x64xbf16>
    %7 = tpu.concatenate %4, %5, %6 in 2 : vector<2x16x64xbf16>, vector<2x16x64xbf16>, vector<2x16x64xbf16> -> vector<2x16x192xbf16>
    %8 = vector.shape_cast %7 : vector<2x16x192xbf16> to vector<32x192xbf16>
    %c0_2 = arith.constant 0 : index
    %c0_3 = arith.constant 0 : index
    %9 = vector.load %arg2[%c0_2, %c0_3] : memref<192x256xbf16, #tpu.memory_space<vmem>>, vector<192x256xbf16>
    %cst_4 = arith.constant dense<0.000000e+00> : vector<32x256xf32>
    %10 = tpu.matmul %8, %9, %cst_4 {dimension_numbers = #tpu.dot_dimension_numbers<[1], [0], [0], [1], [0, 0, 1, 1], [], []>} : vector<32x192xbf16>, vector<192x256xbf16>, vector<32x256xf32> -> vector<32x256xf32>
    %11 = vector.extract_strided_slice %10 {offsets = [0, 0], sizes = [32, 128], strides = [1, 1]} : vector<32x256xf32> to vector<32x128xf32>
    %12 = vector.extract_strided_slice %10 {offsets = [0, 128], sizes = [32, 128], strides = [1, 1]} : vector<32x256xf32> to vector<32x128xf32>
    %c0_5 = arith.constant 0 : index
    %c0_6 = arith.constant 0 : index
    %13 = vector.load %arg10[%c0_5, %c0_6] : memref<1x128xf32, #tpu.memory_space<vmem>>, vector<1x128xf32>
    %14 = vector.broadcast %13 : vector<1x128xf32> to vector<32x128xf32>
    %15 = arith.addf %12, %14 : vector<32x128xf32>
    %c0_7 = arith.constant 0 : index
    %c0_8 = arith.constant 0 : index
    %16 = vector.load %arg4[%c0_7, %c0_8] : memref<1x8xf32, #tpu.memory_space<vmem>>, vector<1x8xf32>
    %c0_9 = arith.constant 0 : index
    %c0_10 = arith.constant 0 : index
    %17 = vector.load %arg5[%c0_9, %c0_10] : memref<1x8xf32, #tpu.memory_space<vmem>>, vector<1x8xf32>
    %c0_11 = arith.constant 0 : index
    %c0_12 = arith.constant 0 : index
    %18 = vector.load %arg8[%c0_11, %c0_12] : memref<128x8xf32, #tpu.memory_space<vmem>>, vector<128x8xf32>
    %c0_13 = arith.constant 0 : index
    %c0_14 = arith.constant 0 : index
    %19 = vector.load %arg9[%c0_13, %c0_14] : memref<8x128xf32, #tpu.memory_space<vmem>>, vector<8x128xf32>
    %cst_15 = arith.constant dense<0.000000e+00> : vector<128xf32>
    %20 = vector.multi_reduction <add>, %11, %cst_15 [0] : vector<32x128xf32> to vector<128xf32>
    %21 = vector.shape_cast %20 : vector<128xf32> to vector<1x128xf32>
    %22 = arith.mulf %11, %11 : vector<32x128xf32>
    %cst_16 = arith.constant dense<0.000000e+00> : vector<128xf32>
    %23 = vector.multi_reduction <add>, %22, %cst_16 [0] : vector<32x128xf32> to vector<128xf32>
    %24 = vector.shape_cast %23 : vector<128xf32> to vector<1x128xf32>
    %25 = tpu.concatenate %21, %24 in 0 : vector<1x128xf32>, vector<1x128xf32> -> vector<2x128xf32>
    %cst_17 = arith.constant dense<0.000000e+00> : vector<2x8xf32>
    %26 = tpu.matmul %25, %18, %cst_17 {dimension_numbers = #tpu.dot_dimension_numbers<[1], [0], [0], [1], [0, 0, 1, 1], [], []>} : vector<2x128xf32>, vector<128x8xf32>, vector<2x8xf32> -> vector<2x8xf32>
    %cst_18 = arith.constant 0.001953125 : f32
    %27 = vector.broadcast %cst_18 : f32 to vector<2x8xf32>
    %28 = arith.mulf %26, %27 : vector<2x8xf32>
    %29 = vector.extract_strided_slice %28 {offsets = [0, 0], sizes = [1, 8], strides = [1, 1]} : vector<2x8xf32> to vector<1x8xf32>
    %30 = vector.extract_strided_slice %28 {offsets = [1, 0], sizes = [1, 8], strides = [1, 1]} : vector<2x8xf32> to vector<1x8xf32>
    %31 = arith.mulf %29, %29 : vector<1x8xf32>
    %32 = arith.subf %30, %31 : vector<1x8xf32>
    %cst_19 = arith.constant 9.99999974E-6 : f32
    %33 = vector.broadcast %cst_19 : f32 to vector<1x8xf32>
    %34 = arith.addf %32, %33 : vector<1x8xf32>
    %35 = math.rsqrt %34 : vector<1x8xf32>
    %36 = arith.mulf %16, %35 : vector<1x8xf32>
    %37 = arith.mulf %29, %36 : vector<1x8xf32>
    %38 = arith.subf %17, %37 : vector<1x8xf32>
    %39 = tpu.concatenate %36, %38 in 0 : vector<1x8xf32>, vector<1x8xf32> -> vector<2x8xf32>
    %cst_20 = arith.constant dense<0.000000e+00> : vector<2x128xf32>
    %40 = tpu.matmul %39, %19, %cst_20 {dimension_numbers = #tpu.dot_dimension_numbers<[1], [0], [0], [1], [0, 0, 1, 1], [], []>} : vector<2x8xf32>, vector<8x128xf32>, vector<2x128xf32> -> vector<2x128xf32>
    %41 = vector.extract_strided_slice %40 {offsets = [0, 0], sizes = [1, 128], strides = [1, 1]} : vector<2x128xf32> to vector<1x128xf32>
    %42 = vector.broadcast %41 : vector<1x128xf32> to vector<32x128xf32>
    %43 = arith.mulf %11, %42 : vector<32x128xf32>
    %44 = vector.extract_strided_slice %40 {offsets = [1, 0], sizes = [1, 128], strides = [1, 1]} : vector<2x128xf32> to vector<1x128xf32>
    %45 = vector.broadcast %44 : vector<1x128xf32> to vector<32x128xf32>
    %46 = arith.addf %43, %45 : vector<32x128xf32>
    %cst_21 = arith.constant 0.000000e+00 : f32
    %47 = vector.broadcast %cst_21 : f32 to vector<32x128xf32>
    %48 = arith.maximumf %46, %47 : vector<32x128xf32>
    %49 = vector.shape_cast %48 : vector<32x128xf32> to vector<2x16x128xf32>
    %50 = arith.truncf %49 : vector<2x16x128xf32> to vector<2x16x128xbf16>
    %cst_22 = arith.constant 0.000000e+00 : bf16
    %51 = vector.broadcast %cst_22 : bf16 to vector<2x1x128xbf16>
    %52 = tpu.concatenate %51, %50, %51 in 1 : vector<2x1x128xbf16>, vector<2x16x128xbf16>, vector<2x1x128xbf16> -> vector<2x18x128xbf16>
    %53 = vector.extract_strided_slice %52 {offsets = [0, 0, 0], sizes = [2, 16, 128], strides = [1, 1, 1]} : vector<2x18x128xbf16> to vector<2x16x128xbf16>
    %54 = vector.extract_strided_slice %52 {offsets = [0, 1, 0], sizes = [2, 16, 128], strides = [1, 1, 1]} : vector<2x18x128xbf16> to vector<2x16x128xbf16>
    %55 = vector.extract_strided_slice %52 {offsets = [0, 2, 0], sizes = [2, 16, 128], strides = [1, 1, 1]} : vector<2x18x128xbf16> to vector<2x16x128xbf16>
    %56 = tpu.concatenate %53, %54, %55 in 2 : vector<2x16x128xbf16>, vector<2x16x128xbf16>, vector<2x16x128xbf16> -> vector<2x16x384xbf16>
    %57 = vector.shape_cast %56 : vector<2x16x384xbf16> to vector<32x384xbf16>
    %c0_23 = arith.constant 0 : index
    %c0_24 = arith.constant 0 : index
    %58 = vector.load %arg3[%c0_23, %c0_24] : memref<384x128xbf16, #tpu.memory_space<vmem>>, vector<384x128xbf16>
    %cst_25 = arith.constant dense<0.000000e+00> : vector<32x128xf32>
    %59 = tpu.matmul %57, %58, %cst_25 {dimension_numbers = #tpu.dot_dimension_numbers<[1], [0], [0], [1], [0, 0, 1, 1], [], []>} : vector<32x384xbf16>, vector<384x128xbf16>, vector<32x128xf32> -> vector<32x128xf32>
    %c0_26 = arith.constant 0 : index
    %c0_27 = arith.constant 0 : index
    %60 = vector.load %arg6[%c0_26, %c0_27] : memref<1x8xf32, #tpu.memory_space<vmem>>, vector<1x8xf32>
    %c0_28 = arith.constant 0 : index
    %c0_29 = arith.constant 0 : index
    %61 = vector.load %arg7[%c0_28, %c0_29] : memref<1x8xf32, #tpu.memory_space<vmem>>, vector<1x8xf32>
    %c0_30 = arith.constant 0 : index
    %c0_31 = arith.constant 0 : index
    %62 = vector.load %arg8[%c0_30, %c0_31] : memref<128x8xf32, #tpu.memory_space<vmem>>, vector<128x8xf32>
    %c0_32 = arith.constant 0 : index
    %c0_33 = arith.constant 0 : index
    %63 = vector.load %arg9[%c0_32, %c0_33] : memref<8x128xf32, #tpu.memory_space<vmem>>, vector<8x128xf32>
    %cst_34 = arith.constant dense<0.000000e+00> : vector<128xf32>
    %64 = vector.multi_reduction <add>, %59, %cst_34 [0] : vector<32x128xf32> to vector<128xf32>
    %65 = vector.shape_cast %64 : vector<128xf32> to vector<1x128xf32>
    %66 = arith.mulf %59, %59 : vector<32x128xf32>
    %cst_35 = arith.constant dense<0.000000e+00> : vector<128xf32>
    %67 = vector.multi_reduction <add>, %66, %cst_35 [0] : vector<32x128xf32> to vector<128xf32>
    %68 = vector.shape_cast %67 : vector<128xf32> to vector<1x128xf32>
    %69 = tpu.concatenate %65, %68 in 0 : vector<1x128xf32>, vector<1x128xf32> -> vector<2x128xf32>
    %cst_36 = arith.constant dense<0.000000e+00> : vector<2x8xf32>
    %70 = tpu.matmul %69, %62, %cst_36 {dimension_numbers = #tpu.dot_dimension_numbers<[1], [0], [0], [1], [0, 0, 1, 1], [], []>} : vector<2x128xf32>, vector<128x8xf32>, vector<2x8xf32> -> vector<2x8xf32>
    %cst_37 = arith.constant 0.001953125 : f32
    %71 = vector.broadcast %cst_37 : f32 to vector<2x8xf32>
    %72 = arith.mulf %70, %71 : vector<2x8xf32>
    %73 = vector.extract_strided_slice %72 {offsets = [0, 0], sizes = [1, 8], strides = [1, 1]} : vector<2x8xf32> to vector<1x8xf32>
    %74 = vector.extract_strided_slice %72 {offsets = [1, 0], sizes = [1, 8], strides = [1, 1]} : vector<2x8xf32> to vector<1x8xf32>
    %75 = arith.mulf %73, %73 : vector<1x8xf32>
    %76 = arith.subf %74, %75 : vector<1x8xf32>
    %cst_38 = arith.constant 9.99999974E-6 : f32
    %77 = vector.broadcast %cst_38 : f32 to vector<1x8xf32>
    %78 = arith.addf %76, %77 : vector<1x8xf32>
    %79 = math.rsqrt %78 : vector<1x8xf32>
    %80 = arith.mulf %60, %79 : vector<1x8xf32>
    %81 = arith.mulf %73, %80 : vector<1x8xf32>
    %82 = arith.subf %61, %81 : vector<1x8xf32>
    %83 = tpu.concatenate %80, %82 in 0 : vector<1x8xf32>, vector<1x8xf32> -> vector<2x8xf32>
    %cst_39 = arith.constant dense<0.000000e+00> : vector<2x128xf32>
    %84 = tpu.matmul %83, %63, %cst_39 {dimension_numbers = #tpu.dot_dimension_numbers<[1], [0], [0], [1], [0, 0, 1, 1], [], []>} : vector<2x8xf32>, vector<8x128xf32>, vector<2x128xf32> -> vector<2x128xf32>
    %85 = vector.extract_strided_slice %84 {offsets = [0, 0], sizes = [1, 128], strides = [1, 1]} : vector<2x128xf32> to vector<1x128xf32>
    %86 = vector.broadcast %85 : vector<1x128xf32> to vector<32x128xf32>
    %87 = arith.mulf %59, %86 : vector<32x128xf32>
    %88 = vector.extract_strided_slice %84 {offsets = [1, 0], sizes = [1, 128], strides = [1, 1]} : vector<2x128xf32> to vector<1x128xf32>
    %89 = vector.broadcast %88 : vector<1x128xf32> to vector<32x128xf32>
    %90 = arith.addf %87, %89 : vector<32x128xf32>
    %91 = arith.addf %90, %15 : vector<32x128xf32>
    %cst_40 = arith.constant 0.000000e+00 : f32
    %92 = vector.broadcast %cst_40 : f32 to vector<32x128xf32>
    %93 = arith.maximumf %91, %92 : vector<32x128xf32>
    %94 = vector.shape_cast %93 : vector<32x128xf32> to vector<2x16x128xf32>
    %c0_41 = arith.constant 0 : index
    %c0_42 = arith.constant 0 : index
    %c0_43 = arith.constant 0 : index
    %95 = vector.load %arg11[%c0_41, %c0_42, %c0_43] : memref<2x16x128xf32, #tpu.memory_space<vmem>>, vector<2x16x128xf32>
    tpu.vector_store %arg11[%c0_41, %c0_42, %c0_43], %94 {strides = array<i32>} : memref<2x16x128xf32, #tpu.memory_space<vmem>>, vector<2x16x128xf32>,
    return
  }
  func.func @transform_0(%arg0: i32) -> (i32, i32, i32) {
    %c0_i32 = arith.constant 0 : i32
    %c0_i32_0 = arith.constant 0 : i32
    %c0_i32_1 = arith.constant 0 : i32
    %c0_i32_2 = arith.constant 0 : i32
    return %c0_i32, %c0_i32_0, %c0_i32_1 : i32, i32, i32
  }
  func.func @transform_1(%arg0: i32) -> (i32, i32) {
    %c0_i32 = arith.constant 0 : i32
    %c0_i32_0 = arith.constant 0 : i32
    %c0_i32_1 = arith.constant 0 : i32
    return %c0_i32, %c0_i32_0 : i32, i32
  }
  func.func @transform_2(%arg0: i32) -> (i32, i32) {
    %c0_i32 = arith.constant 0 : i32
    %c0_i32_0 = arith.constant 0 : i32
    %c0_i32_1 = arith.constant 0 : i32
    return %c0_i32, %c0_i32_0 : i32, i32
  }
  func.func @transform_3(%arg0: i32) -> (i32, i32) {
    %c0_i32 = arith.constant 0 : i32
    %c0_i32_0 = arith.constant 0 : i32
    %c0_i32_1 = arith.constant 0 : i32
    return %c0_i32, %c0_i32_0 : i32, i32
  }
  func.func @transform_4(%arg0: i32) -> (i32, i32) {
    %c0_i32 = arith.constant 0 : i32
    %c0_i32_0 = arith.constant 0 : i32
    %c0_i32_1 = arith.constant 0 : i32
    return %c0_i32, %c0_i32_0 : i32, i32
  }
  func.func @transform_5(%arg0: i32) -> (i32, i32) {
    %c0_i32 = arith.constant 0 : i32
    %c0_i32_0 = arith.constant 0 : i32
    %c0_i32_1 = arith.constant 0 : i32
    return %c0_i32, %c0_i32_0 : i32, i32
  }
  func.func @transform_6(%arg0: i32) -> (i32, i32) {
    %c0_i32 = arith.constant 0 : i32
    %c0_i32_0 = arith.constant 0 : i32
    %c0_i32_1 = arith.constant 0 : i32
    return %c0_i32, %c0_i32_0 : i32, i32
  }
  func.func @transform_7(%arg0: i32) -> (i32, i32) {
    %c0_i32 = arith.constant 0 : i32
    %c0_i32_0 = arith.constant 0 : i32
    %c0_i32_1 = arith.constant 0 : i32
    return %c0_i32, %c0_i32_0 : i32, i32
  }
  func.func @transform_8(%arg0: i32) -> (i32, i32) {
    %c0_i32 = arith.constant 0 : i32
    %c0_i32_0 = arith.constant 0 : i32
    %c0_i32_1 = arith.constant 0 : i32
    return %c0_i32, %c0_i32_0 : i32, i32
  }
  func.func @transform_9(%arg0: i32) -> (i32, i32) {
    %c0_i32 = arith.constant 0 : i32
    %c0_i32_0 = arith.constant 0 : i32
    %c0_i32_1 = arith.constant 0 : i32
    return %c0_i32, %c0_i32_0 : i32, i32
  }
  func.func @transform_10(%arg0: i32) -> (i32, i32, i32) {
    %c0_i32 = arith.constant 0 : i32
    %c0_i32_0 = arith.constant 0 : i32
    %c0_i32_1 = arith.constant 0 : i32
    %c0_i32_2 = arith.constant 0 : i32
    return %c0_i32, %c0_i32_0, %c0_i32_1 : i32, i32, i32
  }
}

</mosaic_0001>

<bundles_post_ra>
// kernel: tile.14
= control target key start
LH: loop header
LB: loop body
LE: loop exit
PB: predicated region body
PF: predicated region fallthrough
CT: control target
= control target key end

     0   :  { %vm6_vm0 = vcmask 1043458   ;;  %vm10_vm1 = vcmask 1045508   ;;  %vm14_vm2 = vcmask 1047558   ;;  %s19_s6 = smov 3  ;;  %s22_s7 = smov 12  ;;  %vm16_vm3 = vcmask 64512   ;;  %s736_s0 = inlined_call_operand.vmem [shape: f32[16,8,8], index: 0, kind: input, shape index: {}]   ;;  %s737_s1 = inlined_call_operand.vmem [shape: f32[128,8], index: 1, kind: output, shape index: {}]  }
   0x1   :  { %v348_v0 = vld [vmem:[%s736_s0 + $0xf] ss:$16 sm:%s19_s6]   ;;  %s27_s12 = smov 48  ;;  %s32_s13 = smov 192  ;;  %vm38_vm4 = vcmask 1048512   ;;  %vm60_vm5 = vcmask 982912  }
   0x2   :  { %v349_v1 = vld [vmem:[%s736_s0 + $0xf] ss:$16 sm:%s22_s7]   ;;  %s63_s18 = smov 3  ;;  %s66_s21 = smov 12  ;;  %vm82_vm6 = vcmask 917312   ;;  %vm104_vm7 = vcmask 851712  }
   0x3   :  { %v25_v2 = vsel %vm6_vm0, %v349_v1, %v348_v0  ;;  %v350_v3 = vld [vmem:[%s736_s0 + $0xf] ss:$16 sm:%s27_s12]   ;;  %v356_v6 = vld [vmem:[%s736_s0 + $0xd] ss:$16 sm:%s63_s18]   ;;  %s71_s22 = smov 48  ;;  %s76_s27 = smov 192 }
   0x4   :  { %v351_v4 = vld [vmem:[%s736_s0 + $0xf] ss:$16 sm:%s32_s13]   ;;  %v30_v5 = vsel %vm10_vm1, %v350_v3, %v25_v2  ;;  %v357_v8 = vld [vmem:[%s736_s0 + $0xd] ss:$16 sm:%s66_s21]   ;;  %s423_s28 = smov 120   ;;  %s41_s2 = smov 3 }
   0x5   :  { %v35_v7 = vsel %vm14_vm2, %v351_v4, %v30_v5  ;;  %v358_v9 = vld [vmem:[%s736_s0 + $0xd] ss:$16 sm:%s71_s22]   ;;  %v69_v10 = vsel %vm6_vm0, %v357_v8, %v356_v6  ;;  %s44_s3 = smov 12  ;;  %v352_v13 = vld [vmem:[%s736_s0 + $0xe] ss:$16 sm:%s41_s2]   ;;  %s49_s8 = smov 48 }
   0x6   :  { %36 = vrot.lane.b32.xlu0 %v35_v7, %s423_s28  ;;  %v359_v11 = vld [vmem:[%s736_s0 + $0xd] ss:$16 sm:%s76_s27]   ;;  %v74_v12 = vsel %vm10_vm1, %v358_v9, %v69_v10  ;;  %s54_s9 = smov 192  ;;  %s85_s14 = smov 3  ;;  %vm126_vm8 = vcmask 786112   ;;  %vm148_vm9 = vcmask 720512  }
   0x7   :  { %v353_v14 = vld [vmem:[%s736_s0 + $0xe] ss:$16 sm:%s44_s3]   ;;  %v79_v15 = vsel %vm14_vm2, %v359_v11, %v74_v12  ;;  %s424_s15 = smov 104   ;;  %v360_v20 = vld [vmem:[%s736_s0 + $0xc] ss:$16 sm:%s85_s14]   ;;  %s88_s18 = smov 12 }
   0x8   :  { %v47_v16 = vsel %vm6_vm0, %v353_v14, %v352_v13  ;;  %v354_v17 = vld [vmem:[%s736_s0 + $0xe] ss:$16 sm:%s49_s8]   ;;  %80 = vrot.lane.b32.xlu1 %v79_v15, %s424_s15  ;;  %s93_s19 = smov 48  ;;  %s98_s24 = smov 192  ;;  %vm170_vm10 = vcmask 654912   ;;  %vm192_vm11 = vcmask 589312  }
   0x9   :  { %v355_v18 = vld [vmem:[%s736_s0 + $0xe] ss:$16 sm:%s54_s9]   ;;  %v52_v19 = vsel %vm10_vm1, %v354_v17, %v47_v16  ;;  %v361_v22 = vld [vmem:[%s736_s0 + $0xc] ss:$16 sm:%s88_s18]   ;;  %s425_s25 = smov 112   ;;  %s107_s28 = smov 3 }
   0xa   :  { %v57_v21 = vsel %vm14_vm2, %v355_v18, %v52_v19  ;;  %v362_v23 = vld [vmem:[%s736_s0 + $0xc] ss:$16 sm:%s93_s19]   ;;  %v91_v24 = vsel %vm6_vm0, %v361_v22, %v360_v20  ;;  %s110_s29 = smov 12  ;;  %v364_v27 = vld [vmem:[%s736_s0 + $0xb] ss:$16 sm:%s107_s28]   ;;  %s115_s5 = smov 48 }
   0xb   :  { %58 = vrot.lane.b32.xlu0 %v57_v21, %s425_s25  ;;  %v363_v25 = vld [vmem:[%s736_s0 + $0xc] ss:$16 sm:%s98_s24]   ;;  %v96_v26 = vsel %vm10_vm1, %v362_v23, %v91_v24  ;;  %s120_s6 = smov 192  ;;  %s129_s11 = smov 3  ;;  %vm214_vm12 = vcmask 523712   ;;  %vm236_vm13 = vcmask 458112  }
   0xc   :  { %v365_v28 = vld [vmem:[%s736_s0 + $0xb] ss:$16 sm:%s110_s29]   ;;  %v101_v29 = vsel %vm14_vm2, %v363_v25, %v96_v26  ;;  %s426_s12 = smov 96   ;;  %v368_v34 = vld [vmem:[%s736_s0 + $0xa] ss:$16 sm:%s129_s11]   ;;  %s132_s15 = smov 12 }
   0xd   :  { %v113_v30 = vsel %vm6_vm0, %v365_v28, %v364_v27  ;;  %v366_v31 = vld [vmem:[%s736_s0 + $0xb] ss:$16 sm:%s115_s5]   ;;  %102 = vrot.lane.b32.xlu1 %v101_v29, %s426_s12  ;;  %s137_s16 = smov 48  ;;  %s142_s21 = smov 192  ;;  %vm258_vm14 = vcmask 392512   ;;  %vm280_vm15 = vcmask 326912  }
   0xe   :  { %v367_v32 = vld [vmem:[%s736_s0 + $0xb] ss:$16 sm:%s120_s6]   ;;  %v118_v33 = vsel %vm10_vm1, %v366_v31, %v113_v30  ;;  %v369_v36 = vld [vmem:[%s736_s0 + $0xa] ss:$16 sm:%s132_s15]   ;;  %s427_s22 = smov 88   ;;  %s151_s25 = smov 3 }
   0xf   :  { %v123_v35 = vsel %vm14_vm2, %v367_v32, %v118_v33  ;;  %v370_v37 = vld [vmem:[%s736_s0 + $0xa] ss:$16 sm:%s137_s16]   ;;  %v135_v38 = vsel %vm6_vm0, %v369_v36, %v368_v34  ;;  %s154_s26 = smov 12  ;;  %v372_v41 = vld [vmem:[%s736_s0 + $0x9] ss:$16 sm:%s151_s25]   ;;  %s159_s2 = smov 48 }
  0x10   :  { %124 = vrot.lane.b32.xlu0 %v123_v35, %s427_s22  ;;  %v371_v39 = vld [vmem:[%s736_s0 + $0xa] ss:$16 sm:%s142_s21]   ;;  %v140_v40 = vsel %vm10_vm1, %v370_v37, %v135_v38  ;;  %s164_s3 = smov 192  ;;  %s173_s8 = smov 3 }
  0x11   :  { %v373_v42 = vld [vmem:[%s736_s0 + $0x9] ss:$16 sm:%s154_s26]   ;;  %v145_v43 = vsel %vm14_vm2, %v371_v39, %v140_v40  ;;  %s428_s9 = smov 80   ;;  %v376_v48 = vld [vmem:[%s736_s0 + $0x8] ss:$16 sm:%s173_s8]   ;;  %s176_s12 = smov 12 }
  0x12   :  { %v157_v44 = vsel %vm6_vm0, %v373_v42, %v372_v41  ;;  %v374_v45 = vld [vmem:[%s736_s0 + $0x9] ss:$16 sm:%s159_s2]   ;;  %146 = vrot.lane.b32.xlu1 %v145_v43, %s428_s9  ;;  %s181_s13 = smov 48  ;;  %s186_s18 = smov 192 }
  0x13   :  { %v375_v46 = vld [vmem:[%s736_s0 + $0x9] ss:$16 sm:%s164_s3]   ;;  %v162_v47 = vsel %vm10_vm1, %v374_v45, %v157_v44  ;;  %v377_v50 = vld [vmem:[%s736_s0 + $0x8] ss:$16 sm:%s176_s12]   ;;  %s429_s19 = smov 72   ;;  %s195_s22 = smov 3 }
  0x14   :  { %v167_v49 = vsel %vm14_vm2, %v375_v46, %v162_v47  ;;  %v378_v51 = vld [vmem:[%s736_s0 + $0x8] ss:$16 sm:%s181_s13]   ;;  %v179_v52 = vsel %vm6_vm0, %v377_v50, %v376_v48  ;;  %s198_s23 = smov 12  ;;  %v380_v55 = vld [vmem:[%s736_s0 + $0x7] ss:$16 sm:%s195_s22]   ;;  %s203_s28 = smov 48 }
  0x15   :  { %168 = vrot.lane.b32.xlu0 %v167_v49, %s429_s19  ;;  %v379_v53 = vld [vmem:[%s736_s0 + $0x8] ss:$16 sm:%s186_s18]   ;;  %v184_v54 = vsel %vm10_vm1, %v378_v51, %v179_v52  ;;  %s208_s29 = smov 192  ;;  %s217_s5 = smov 3 }
  0x16   :  { %v381_v56 = vld [vmem:[%s736_s0 + $0x7] ss:$16 sm:%s198_s23]   ;;  %v189_v57 = vsel %vm14_vm2, %v379_v53, %v184_v54  ;;  %s430_s6 = smov 64   ;;  %v384_v62 = vld [vmem:[%s736_s0 + $0x6] ss:$16 sm:%s217_s5]   ;;  %s220_s9 = smov 12 }
  0x17   :  { %v201_v58 = vsel %vm6_vm0, %v381_v56, %v380_v55  ;;  %v382_v59 = vld [vmem:[%s736_s0 + $0x7] ss:$16 sm:%s203_s28]   ;;  %190 = vrot.lane.b32.xlu1 %v189_v57, %s430_s6  ;;  %s225_s10 = smov 48  ;;  %s230_s15 = smov 192 }
  0x18   :  { %v383_v60 = vld [vmem:[%s736_s0 + $0x7] ss:$16 sm:%s208_s29]   ;;  %v206_v61 = vsel %vm10_vm1, %v382_v59, %v201_v58  ;;  %v385_v0 = vld [vmem:[%s736_s0 + $0x6] ss:$16 sm:%s220_s9]   ;;  %s431_s16 = smov 56   ;;  %s239_s19 = smov 3 }
  0x19   :  { %v211_v63 = vsel %vm14_vm2, %v383_v60, %v206_v61  ;;  %v386_v1 = vld [vmem:[%s736_s0 + $0x6] ss:$16 sm:%s225_s10]   ;;  %v223_v2 = vsel %vm6_vm0, %v385_v0, %v384_v62  ;;  %s242_s20 = smov 12  ;;  %v388_v5 = vld [vmem:[%s736_s0 + $0x5] ss:$16 sm:%s239_s19]   ;;  %s247_s25 = smov 48 }
  0x1a   :  { %212 = vrot.lane.b32.xlu0 %v211_v63, %s431_s16  ;;  %v387_v3 = vld [vmem:[%s736_s0 + $0x6] ss:$16 sm:%s230_s15]   ;;  %v228_v4 = vsel %vm10_vm1, %v386_v1, %v223_v2  ;;  %s252_s26 = smov 192  ;;  %s261_s2 = smov 3 }
  0x1b   :  { %v389_v6 = vld [vmem:[%s736_s0 + $0x5] ss:$16 sm:%s242_s20]   ;;  %v233_v7 = vsel %vm14_vm2, %v387_v3, %v228_v4  ;;  %s432_s3 = smov 48   ;;  %v392_v12 = vld [vmem:[%s736_s0 + $0x4] ss:$16 sm:%s261_s2]   ;;  %s264_s6 = smov 12 }
  0x1c   :  { %v245_v8 = vsel %vm6_vm0, %v389_v6, %v388_v5  ;;  %v390_v9 = vld [vmem:[%s736_s0 + $0x5] ss:$16 sm:%s247_s25]   ;;  %234 = vrot.lane.b32.xlu1 %v233_v7, %s432_s3  ;;  %s269_s7 = smov 48  ;;  %s274_s12 = smov 192 }
  0x1d   :  { %v391_v10 = vld [vmem:[%s736_s0 + $0x5] ss:$16 sm:%s252_s26]   ;;  %v250_v11 = vsel %vm10_vm1, %v390_v9, %v245_v8  ;;  %v393_v14 = vld [vmem:[%s736_s0 + $0x4] ss:$16 sm:%s264_s6]   ;;  %s433_s13 = smov 40   ;;  %s283_s16 = smov 3 }
  0x1e   :  { %v255_v13 = vsel %vm14_vm2, %v391_v10, %v250_v11  ;;  %v394_v15 = vld [vmem:[%s736_s0 + $0x4] ss:$16 sm:%s269_s7]   ;;  %v267_v16 = vsel %vm6_vm0, %v393_v14, %v392_v12  ;;  %s286_s17 = smov 12  ;;  %v396_v19 = vld [vmem:[%s736_s0 + $0x3] ss:$16 sm:%s283_s16]   ;;  %s291_s22 = smov 48 }
  0x1f   :  { %256 = vrot.lane.b32.xlu0 %v255_v13, %s433_s13  ;;  %v395_v17 = vld [vmem:[%s736_s0 + $0x4] ss:$16 sm:%s274_s12]   ;;  %v272_v18 = vsel %vm10_vm1, %v394_v15, %v267_v16  ;;  %s296_s23 = smov 192  ;;  %s305_s28 = smov 3 }
  0x20   :  { %v397_v20 = vld [vmem:[%s736_s0 + $0x3] ss:$16 sm:%s286_s17]   ;;  %v277_v21 = vsel %vm14_vm2, %v395_v17, %v272_v18  ;;  %s434_s29 = smov 32   ;;  %v400_v26 = vld [vmem:[%s736_s0 + $0x2] ss:$16 sm:%s305_s28]   ;;  %s308_s3 = smov 12 }
  0x21   :  { %v289_v22 = vsel %vm6_vm0, %v397_v20, %v396_v19  ;;  %v398_v23 = vld [vmem:[%s736_s0 + $0x3] ss:$16 sm:%s291_s22]   ;;  %278 = vrot.lane.b32.xlu1 %v277_v21, %s434_s29  ;;  %s313_s4 = smov 48  ;;  %s318_s9 = smov 192 }
  0x22   :  { %v399_v24 = vld [vmem:[%s736_s0 + $0x3] ss:$16 sm:%s296_s23]   ;;  %v294_v25 = vsel %vm10_vm1, %v398_v23, %v289_v22  ;;  %v401_v28 = vld [vmem:[%s736_s0 + $0x2] ss:$16 sm:%s308_s3]   ;;  %s435_s10 = smov 24   ;;  %s327_s13 = smov 3 }
  0x23   :  { %v299_v27 = vsel %vm14_vm2, %v399_v24, %v294_v25  ;;  %v402_v29 = vld [vmem:[%s736_s0 + $0x2] ss:$16 sm:%s313_s4]   ;;  %v311_v30 = vsel %vm6_vm0, %v401_v28, %v400_v26  ;;  %s330_s14 = smov 12  ;;  %v404_v33 = vld [vmem:[%s736_s0 + $0x1] ss:$16 sm:%s327_s13]   ;;  %s335_s19 = smov 48 }
  0x24   :  { %300 = vrot.lane.b32.xlu0 %v299_v27, %s435_s10  ;;  %v403_v31 = vld [vmem:[%s736_s0 + $0x2] ss:$16 sm:%s318_s9]   ;;  %v316_v32 = vsel %vm10_vm1, %v402_v29, %v311_v30  ;;  %s340_s20 = smov 192  ;;  %s2_s25 = smov 3 }
  0x25   :  { %v405_v34 = vld [vmem:[%s736_s0 + $0x1] ss:$16 sm:%s330_s14]   ;;  %v321_v35 = vsel %vm14_vm2, %v403_v31, %v316_v32  ;;  %s436_s26 = smov 16   ;;  %s4_s27 = smov 12  ;;  %v3_v40 = vld [vmem:[%s736_s0] ss:$16 sm:%s2_s25]  }
  0x26   :  { %v333_v36 = vsel %vm6_vm0, %v405_v34, %v404_v33  ;;  %v406_v37 = vld [vmem:[%s736_s0 + $0x1] ss:$16 sm:%s335_s19]   ;;  %322 = vrot.lane.b32.xlu1 %v321_v35, %s436_s26  ;;  %s8_s28 = smov 48  ;;  %s12_s2 = smov 192 }
  0x27   :  { %v407_v38 = vld [vmem:[%s736_s0 + $0x1] ss:$16 sm:%s340_s20]   ;;  %v338_v39 = vsel %vm10_vm1, %v406_v37, %v333_v36  ;;  %v5_v42 = vld [vmem:[%s736_s0] ss:$16 sm:%s4_s27]   ;;  %s437_s7 = smov 8  }
  0x28   :  { %v343_v41 = vsel %vm14_vm2, %v407_v38, %v338_v39  ;;  %v9_v43 = vld [vmem:[%s736_s0] ss:$16 sm:%s8_s28]   ;;  %v7_v44 = vsel %vm6_vm0, %v5_v42, %v3_v40  ;;  %vm302_vm0 = vcmask 261312  }
  0x29   :  { %344 = vrot.lane.b32.xlu0 %v343_v41, %s437_s7  ;;  %v13_v45 = vld [vmem:[%s736_s0] ss:$16 sm:%s12_s2]   ;;  %v11_v46 = vsel %vm10_vm1, %v9_v43, %v7_v44  ;;  %vm324_vm1 = vcmask 195712  }
  0x2a   :  { %v15_v47 = vsel %vm14_vm2, %v13_v45, %v11_v46  ;;  %vm346_vm2 = vcmask 130112  }
  0x2b   :  { %17 = vst.msk [vmem:[%s737_s1] sm:$0xff] %vm16_vm3, %v15_v47  }
  0x78   :  { %v37_v48 = vpop.permute.xlu0 %36  }
  0x79   :  { %39 = vst.msk [vmem:[%s737_s1] sm:$0xff] %vm38_vm4, %v37_v48  }
  0x7a   :  { %v81_v49 = vpop.permute.xlu1 %80  }
  0x7d   :  { %v59_v50 = vpop.permute.xlu0 %58  }
  0x7e   :  { %61 = vst.msk [vmem:[%s737_s1] sm:$0xff] %vm60_vm5, %v59_v50  }
  0x7f   :  { %83 = vst.msk [vmem:[%s737_s1] sm:$0xff] %vm82_vm6, %v81_v49   ;;  %v103_v51 = vpop.permute.xlu1 %102  }
  0x80   :  { %105 = vst.msk [vmem:[%s737_s1] sm:$0xff] %vm104_vm7, %v103_v51  }
  0x82   :  { %v125_v52 = vpop.permute.xlu0 %124  }
  0x83   :  { %127 = vst.msk [vmem:[%s737_s1] sm:$0xff] %vm126_vm8, %v125_v52  }
  0x84   :  { %v147_v53 = vpop.permute.xlu1 %146  }
  0x85   :  { %149 = vst.msk [vmem:[%s737_s1] sm:$0xff] %vm148_vm9, %v147_v53  }
  0x87   :  { %v169_v54 = vpop.permute.xlu0 %168  }
  0x88   :  { %171 = vst.msk [vmem:[%s737_s1] sm:$0xff] %vm170_vm10, %v169_v54  }
  0x89   :  { %v191_v55 = vpop.permute.xlu1 %190  }
  0x8a   :  { %193 = vst.msk [vmem:[%s737_s1] sm:$0xff] %vm192_vm11, %v191_v55  }
  0x8c   :  { %v213_v56 = vpop.permute.xlu0 %212  }
  0x8d   :  { %215 = vst.msk [vmem:[%s737_s1] sm:$0xff] %vm214_vm12, %v213_v56  }
  0x8e   :  { %v235_v57 = vpop.permute.xlu1 %234  }
  0x8f   :  { %237 = vst.msk [vmem:[%s737_s1] sm:$0xff] %vm236_vm13, %v235_v57  }
  0x91   :  { %v257_v58 = vpop.permute.xlu0 %256  }
  0x92   :  { %259 = vst.msk [vmem:[%s737_s1] sm:$0xff] %vm258_vm14, %v257_v58  }
  0x93   :  { %v279_v59 = vpop.permute.xlu1 %278  }
  0x94   :  { %281 = vst.msk [vmem:[%s737_s1] sm:$0xff] %vm280_vm15, %v279_v59  }
  0x96   :  { %v301_v60 = vpop.permute.xlu0 %300  }
  0x97   :  { %303 = vst.msk [vmem:[%s737_s1] sm:$0xff] %vm302_vm0, %v301_v60  }
  0x98   :  { %v323_v61 = vpop.permute.xlu1 %322  }
  0x99   :  { %325 = vst.msk [vmem:[%s737_s1] sm:$0xff] %vm324_vm1, %v323_v61  }
  0x9b   :  { %v345_v62 = vpop.permute.xlu0 %344  }
  0x9c   :  { %347 = vst.msk [vmem:[%s737_s1] sm:$0xff] %vm346_vm2, %v345_v62  }

// kernel: residual_forward.1
= control target key start
LH: loop header
LB: loop body
LE: loop exit
PB: predicated region body
PF: predicated region fallthrough
CT: control target
= control target key end

     0   :  { %vm61_vm0 = vsmask.f32 256  ;;  %vm60_vm1 = vcmask 1040384   ;;  %vm67_vm3 = vsmask.f32 7424  ;;  %vm100_vm4 = vcmask 1046528   ;;  %s1978_s0 = inlined_call_operand.vmem [shape: f32[2,16,64], index: 0, kind: input, shape index: {}]   ;;  %s1979_s1 = inlined_call_operand.vmem [shape: bf16[192,256], index: 1, kind: input, shape index: {}]   ;;  %s1980_s7 = inlined_call_operand.vmem [shape: f32[128,8], index: 7, kind: input, shape index: {}]   ;;  %s1981_s8 = inlined_call_operand.vmem [shape: f32[8,128], index: 8, kind: input, shape index: {}]   ;;  %s1982_s2 = inlined_call_operand.vmem [shape: bf16[384,128], index: 2, kind: input, shape index: {}]   ;;  %s1983_s3 = inlined_call_operand.vmem [shape: f32[1,8], index: 3, kind: input, shape index: {}]   ;;  %s1984_s4 = inlined_call_operand.vmem [shape: f32[1,8], index: 4, kind: input, shape index: {}]   ;;  %s1985_s5 = inlined_call_operand.vmem [shape: f32[1,8], index: 5, kind: input, shape index: {}]   ;;  %s1986_s6 = inlined_call_operand.vmem [shape: f32[1,8], index: 6, kind: input, shape index: {}]   ;;  %s1987_s9 = inlined_call_operand.vmem [shape: f32[1,128], index: 9, kind: input, shape index: {}]   ;;  %s1988_s10 = inlined_call_operand.vmem [shape: f32[2,16,128], index: 10, kind: output, shape index: {}]  }
   0x1   :  { %v36_v0 = vld [vmem:[%s1978_s0] sm:$0xff]  ;;  %v37_v1 = vld [vmem:[%s1978_s0 + $0x8] sm:$0xff]  ;;  %v38_v3 = vld [vmem:[%s1978_s0 + $0x10] sm:$0xff]  ;;  %vm107_vm5 = vcmask 523264   ;;  %s1503_s18 = smov 64   ;;  %v1504_v48 = vmov 0.0|0.0  }
   0x2   :  { %v40_v2 = vpack.c.bf16 %v37_v1, %v36_v0  ;;  %v39_v4 = vld [vmem:[%s1978_s0 + $0x18] sm:$0xff]  ;;  %v1439_v6 = vld [vmem:[%s1979_s1 + $0x4] ss:$8 sps:$4 sm:$0xff]   ;;  %v1441_v7 = vld [vmem:[%s1979_s1] ss:$8 sps:$4 sm:$0xff]   ;;  %1386 = vmatprep.subr.bf16.mxu1 %v1504_v48  ;;  %vm1505_vm6 = vmmov 0  }
   0x3   :  { %v41_v5 = vpack.c.bf16 %v39_v4, %v38_v3  ;;  %v1442_v10 = vld [vmem:[%s1979_s1 + $0x14] ss:$8 sps:$4 sm:$0xff]   ;;  %264 = vmatprep.subr.bf16.mxu0 %v1439_v6  ;;  %v1444_v14 = vld [vmem:[%s1979_s1 + $0x10] ss:$8 sps:$4 sm:$0xff]   ;;  %vm1589_vm2 = vmand %vm60_vm1, %vm61_vm0  ;;  %vm476_vm7 = vcmask 64512  }
   0x4   :  { %v43_v8 = vshrl.u32 %v40_v2, 16  ;;  %v46_v9 = vshll.u32 %v40_v2, 16  ;;  %265 = vmatpush1.bf16.msra.mxu0 %v1441_v7  ;;  %v1445_v17 = vld [vmem:[%s1979_s1 + $0x24] ss:$8 sps:$4 sm:$0xff]   ;;  %v1447_v24 = vld [vmem:[%s1979_s1 + $0x20] ss:$8 sps:$4 sm:$0xff]  }
   0x5   :  { %v50_v11 = vshrl.u32 %v41_v5, 16  ;;  %v53_v12 = vshll.u32 %v41_v5, 16  ;;  %266 = vmatprep.subr.bf16.mxu0 %v1442_v10  ;;  %v1448_v25 = vld [vmem:[%s1979_s1 + $0x34] ss:$8 sps:$4 sm:$0xff]   ;;  %v1450_v35 = vld [vmem:[%s1979_s1 + $0x30] ss:$8 sps:$4 sm:$0xff]  }
   0x6   :  { %v45_v13 = vrot.slane %v43_v8, 7  ;;  %v1451_v39 = vld [vmem:[%s1979_s1 + $0x44] ss:$8 sps:$4 sm:$0xff]   ;;  %v1453_v44 = vld [vmem:[%s1979_s1 + $0x40] ss:$8 sps:$4 sm:$0xff]   ;;  %v332_v7 = vld [vmem:[%s1980_s7 + $0x10] sm:$0xff] }
   0x7   :  { %v52_v16 = vrot.slane %v50_v11, 7  ;;  %v1454_v46 = vld [vmem:[%s1979_s1 + $0x54] ss:$8 sps:$4 sm:$0xff]   ;;  %v330_v47 = vld [vmem:[%s1980_s7] sm:$0xff]  ;;  %v331_v49 = vld [vmem:[%s1980_s7 + $0x8] sm:$0xff] }
   0x8   :  { %v48_v18 = vor.u32 %v46_v9, %v45_v13  ;;  %v65_v19 = vsel %vm1589_vm2, %v45_v13, 0  ;;  %267 = vmatpush1.bf16.msra.mxu0 %v1444_v14  ;;  %v1645_v50 = vpack.c.bf16 %v331_v49, %v330_v47  ;;  %v1456_v51 = vld [vmem:[%s1979_s1 + $0x50] ss:$8 sps:$4 sm:$0xff]   ;;  %v1457_v52 = vld [vmem:[%s1979_s1 + $0x64] ss:$8 sps:$4 sm:$0xff]  }
   0x9   :  { %v76_v20 = vshll.u32 %v65_v19, 16  ;;  %v55_v21 = vor.u32 %v53_v12, %v52_v16  ;;  %v1600_v22 = vsel %vm1589_vm2, %v52_v16, 0  ;;  %268 = vmatprep.subr.bf16.mxu0 %v1445_v17  ;;  %v102_v40 = vrot.slane %v65_v19, 1  ;;  %v1459_v53 = vld [vmem:[%s1979_s1 + $0x60] ss:$8 sps:$4 sm:$0xff]   ;;  %v333_v8 = vld [vmem:[%s1980_s7 + $0x18] sm:$0xff] }
   0xa   :  { %v1604_v23 = vsel %vm1589_vm2, 0, %v48_v18  ;;  %v88_v29 = vshll.u32 %v1600_v22, 16  ;;  %1388 = vmatpush3.bf16.msra.mxu1 %v1645_v50  ;;  %v1460_v54 = vld [vmem:[%s1979_s1 + $0x74] ss:$8 sps:$4 sm:$0xff]   ;;  %v1462_v55 = vld [vmem:[%s1979_s1 + $0x70] ss:$8 sps:$4 sm:$0xff]   ;;  %v1702_v9 = vpack.c.bf16 %v333_v8, %v332_v7 }
   0xb   :  { %v69_v26 = vshrl.u32 %v1604_v23, 16  ;;  %v71_v27 = vshll.u32 %v1604_v23, 16  ;;  %v1616_v28 = vsel %vm1589_vm2, 0, %v55_v21  ;;  %v78_v33 = vrot.slane %v76_v20, 1  ;;  %1389 = vmatprep.subr.bf16.mxu1 %v1504_v48  ;;  %v1463_v56 = vld [vmem:[%s1979_s1 + $0x84] ss:$8 sps:$4 sm:$0xff]  }
   0xc   :  { %v81_v30 = vshrl.u32 %v1616_v28, 16  ;;  %v83_v31 = vshll.u32 %v1616_v28, 16  ;;  %269 = vmatpush1.bf16.msra.mxu0 %v1447_v24  ;;  %v101_v36 = vrot.slane %v1604_v23, 1  ;;  %v90_v38 = vrot.slane %v88_v29, 1  ;;  %v1465_v57 = vld [vmem:[%s1979_s1 + $0x80] ss:$8 sps:$4 sm:$0xff]  }
   0xd   :  { %v73_v32 = vrot.slane %v71_v27, 1  ;;  %270 = vmatprep.subr.bf16.mxu0 %v1448_v25  ;;  %v1466_v58 = vld [vmem:[%s1979_s1 + $0x94] ss:$8 sps:$4 sm:$0xff]   ;;  %v1468_v59 = vld [vmem:[%s1979_s1 + $0x90] ss:$8 sps:$4 sm:$0xff]   ;;  %v104_v0 = vrot.slane %v1616_v28, 1 }
   0xe   :  { %v85_v34 = vrot.slane %v83_v31, 1  ;;  %v103_v43 = vsel %vm100_vm4, %v101_v36, %v102_v40  ;;  %v1469_v60 = vld [vmem:[%s1979_s1 + $0xa4] ss:$8 sps:$4 sm:$0xff]   ;;  %v1471_v61 = vld [vmem:[%s1979_s1 + $0xa0] ss:$8 sps:$4 sm:$0xff]   ;;  %v105_v1 = vrot.slane %v1600_v22, 1  ;;  %1391 = vmatpush3.bf16.msra.mxu1 %v1702_v9 }
   0xf   :  { %v74_v37 = vor.u32 %v73_v32, %v69_v26  ;;  %1181 = vmatprep.mubr.msk.bf16.mxu0 %vm107_vm5, %v103_v43  ;;  %v1472_v62 = vld [vmem:[%s1979_s1 + $0xb4] ss:$8 sps:$4 sm:$0xff]   ;;  %v1474_v63 = vld [vmem:[%s1979_s1 + $0xb0] ss:$8 sps:$4 sm:$0xff]   ;;  %1392 = vmatprep.subr.bf16.mxu1 %v1504_v48  ;;  %v334_v10 = vld [vmem:[%s1980_s7 + $0x20] sm:$0xff] }
  0x10   :  { %v86_v41 = vor.u32 %v85_v34, %v81_v30  ;;  %271 = vmatpush1.bf16.msra.mxu0 %v1450_v35  ;;  %v106_v3 = vsel %vm100_vm4, %v104_v0, %v105_v1  ;;  %v335_v11 = vld [vmem:[%s1980_s7 + $0x28] sm:$0xff]  ;;  %v336_v13 = vld [vmem:[%s1980_s7 + $0x30] sm:$0xff]  ;;  %v337_v14 = vld [vmem:[%s1980_s7 + $0x38] sm:$0xff] }
  0x11   :  { %v79_v42 = vsel %vm67_vm3, %v74_v37, %v78_v33  ;;  %272 = vmatprep.subr.bf16.mxu0 %v1451_v39  ;;  %v1712_v12 = vpack.c.bf16 %v335_v11, %v334_v10  ;;  %v1722_v16 = vpack.c.bf16 %v337_v14, %v336_v13  ;;  %v338_v17 = vld [vmem:[%s1980_s7 + $0x40] sm:$0xff]  ;;  %v339_v18 = vld [vmem:[%s1980_s7 + $0x48] sm:$0xff]  ;;  %v340_v20 = vld [vmem:[%s1980_s7 + $0x50] sm:$0xff]  ;;  %v1507_v13 = vmov 1966171168  }
  0x12   :  { %92 = vrot.lane.b32.xlu0 %v79_v42, %s1503_s18  ;;  %v91_v45 = vsel %vm67_vm3, %v86_v41, %v90_v38  ;;  %v1732_v19 = vpack.c.bf16 %v339_v18, %v338_v17  ;;  %v341_v21 = vld [vmem:[%s1980_s7 + $0x58] sm:$0xff]  ;;  %v343_v24 = vld [vmem:[%s1980_s7 + $0x68] sm:$0xff]  ;;  %v344_v26 = vld [vmem:[%s1980_s7 + $0x70] sm:$0xff]  ;;  %v451_v14 = vunpack.c.l.s4 %v1507_v13  ;;  %v453_v17 = vlaneseq }
  0x13   :  { %1394 = vmatpush3.bf16.msra.mxu1 %v1712_v12  ;;  %v1742_v22 = vpack.c.bf16 %v341_v21, %v340_v20  ;;  %v345_v27 = vld [vmem:[%s1980_s7 + $0x78] sm:$0xff]  ;;  %v1475_v0 = vld [vmem:[%s1982_s2 + $0x80] sm:$0xff]  }
  0x14   :  { %273 = vmatpush1.bf16.msra.mxu0 %v1453_v44  ;;  %1395 = vmatprep.subr.bf16.mxu1 %v1504_v48  ;;  %v1763_v29 = vpack.c.bf16 %v345_v27, %v344_v26  ;;  %v1476_v1 = vld [vmem:[%s1982_s2 + $0x40] sm:$0xff]   ;;  %v452_v18 = vunpack.c.0.s8 %v451_v14  ;;  %v1817_v20 = vshrl.u32 %v453_v17, 7 }
  0x15   :  { %274 = vmatprep.subr.bf16.mxu0 %v1454_v46  ;;  %v328_v27 = vld [vmem:[%s1983_s3] sm:$0x1] }
  0x16   :  { %94 = vrot.lane.b32.xlu0 %v91_v45, %s1503_s18  ;;  %v1820_v21 = vsub.s32 %v452_v18, %v1817_v20 }
  0x17   :  { %1397 = vmatpush3.bf16.msra.mxu1 %v1722_v16 }
  0x18   :  { %275 = vmatpush1.bf16.msra.mxu0 %v1456_v51  ;;  %1398 = vmatprep.subr.bf16.mxu1 %v1504_v48 }
  0x19   :  { %276 = vmatprep.subr.bf16.mxu0 %v1457_v52 }
  0x1b   :  { %1400 = vmatpush3.bf16.msra.mxu1 %v1732_v19 }
  0x1c   :  { %277 = vmatpush1.bf16.msra.mxu0 %v1459_v53  ;;  %1401 = vmatprep.subr.bf16.mxu1 %v1504_v48 }
  0x1d   :  { %278 = vmatprep.subr.bf16.mxu0 %v1460_v54 }
  0x1f   :  { %1403 = vmatpush3.bf16.msra.mxu1 %v1742_v22 }
  0x20   :  { %279 = vmatpush1.bf16.msra.mxu0 %v1462_v55  ;;  %1404 = vmatprep.subr.bf16.mxu1 %v1504_v48 }
  0x21   :  { %280 = vmatprep.subr.bf16.mxu0 %v1463_v56 }
  0x24   :  { %281 = vmatpush1.bf16.msra.mxu0 %v1465_v57 }
  0x25   :  { %282 = vmatprep.subr.bf16.mxu0 %v1466_v58 }
  0x28   :  { %283 = vmatpush1.bf16.msra.mxu0 %v1468_v59 }
  0x29   :  { %284 = vmatprep.subr.bf16.mxu0 %v1469_v60 }
  0x2c   :  { %285 = vmatpush1.bf16.msra.mxu0 %v1471_v61 }
  0x2d   :  { %286 = vmatprep.subr.bf16.mxu0 %v1472_v62 }
  0x30   :  { %287 = vmatpush1.bf16.msra.mxu0 %v1474_v63  ;;  %v1802_v63 = vld [vmem:[%s1981_s8] sm:$0xff] }
  0x31   :  { %1326 = vmatprep.subr.bf16.mxu0 %v1475_v0 }
  0x84   :  { %v93_v2 = vpop.permute.xlu0 %92 }
  0x85   :  { %v109_v4 = vsel %vm107_vm5, %v1604_v23, %v93_v2  ;;  %v342_v23 = vld [vmem:[%s1980_s7 + $0x60] sm:$0xff]  ;;  %v1477_v2 = vld [vmem:[%s1982_s2 + $0x88] sm:$0xff]  }
  0x86   :  { %297 = vmatmul.mubr.bf16.vlgmr.msra.gmra.mrb[0].mxu0 %v109_v4  ;;  %v1752_v25 = vpack.c.bf16 %v343_v24, %v342_v23 }
  0x87   :  { %1182 = vmatprep.mubr.msk.bf16.mxu0 %vm107_vm5, %v106_v3  ;;  %1327 = vmatpush3.bf16.msra.mxu0 %v1475_v0  ;;  %v1480_v3 = vld [vmem:[%s1982_s2 + $0x90] sm:$0xff]  }
  0x88   :  { %v95_v5 = vpop.permute.xlu0 %94  ;;  %1406 = vmatpush3.bf16.msra.mxu1 %v1752_v25  ;;  %1328 = vmatprep.subr.bf16.mxu0 %v1477_v2  ;;  %v1494_v0 = vld [vmem:[%s1982_s2 + $0x70] sm:$0xff]  }
  0x89   :  { %v112_v6 = vsel %vm107_vm5, %v1616_v28, %v95_v5  ;;  %v1506_v28 = vmov 0.0   ;;  %1407 = vmatprep.subr.bf16.mxu1 %v1504_v48 }
  0x8a   :  { %1318 = vmatprep.mubr.msk.f32.mxu1 %vm1505_vm6, %v1506_v28 }
  0x8b   :  { %1329 = vmatpush3.bf16.msra.mxu0 %v1477_v2  ;;  %v1496_v2 = vld [vmem:[%s1982_s2 + $0x30] sm:$0xff]  }
  0x8c   :  { %1409 = vmatpush3.bf16.msra.mxu1 %v1763_v29  ;;  %1330 = vmatprep.subr.bf16.mxu0 %v1480_v3 }
  0x8d   :  { %1321 = vmatprep.subr.mxu1 %v1506_v28 }
  0x8e   :  { %307 = vmatmul.mubr.bf16.gmra.mrb[4].mxu0 %v112_v6 }
  0x8f   :  { %1331 = vmatpush3.bf16.msra.mxu0 %v1480_v3  ;;  %v1497_v3 = vld [vmem:[%s1982_s2 + $0x78] sm:$0xff]  }
 0x159   :  { %v1768_v30 = vpop.f32.mrb[0].mxu0 }
 0x15a   :  { %v1770_v31 = vpop.f32.mrb[1].mxu0  ;;  %v356_v33 = vmul.f32 %v1768_v30, %v1768_v30 }
 0x15b   :  { %v1772_v32 = vpop.f32.mrb[2].mxu0 }
 0x15c   :  { %v347_v34 = vadd.f32 %v1772_v32, %v1768_v30  ;;  %v357_v35 = vmul.f32 %v1772_v32, %v1772_v32  ;;  %v1780_v36 = vpop.f32.mrb[3].mxu0 }
 0x15e   :  { %v360_v37 = vadd.f32 %v357_v35, %v356_v33  ;;  %v329_v35 = vld [vmem:[%s1984_s4] sm:$0x1] }
 0x161   :  { %v1782_v38 = vpop.f32.mrb[4].mxu0 }
 0x162   :  { %v348_v39 = vadd.f32 %v347_v34, %v1782_v38  ;;  %v358_v40 = vmul.f32 %v1782_v38, %v1782_v38  ;;  %v1787_v41 = vpop.f32.mrb[5].mxu0 }
 0x163   :  { %v1789_v42 = vpop.f32.mrb[6].mxu0 }
 0x164   :  { %v361_v43 = vadd.f32 %v360_v37, %v358_v40  ;;  %v349_v44 = vadd.f32 %v348_v39, %v1789_v42  ;;  %v359_v45 = vmul.f32 %v1789_v42, %v1789_v42  ;;  %v1794_v46 = vpop.f32.mrb[7].mxu0  ;;  %v1831_v39 = vsub.s32 0, %v1817_v20 }
 0x166   :  { %v350_v47 = vrot.slane %v349_v44, 4  ;;  %v362_v49 = vadd.f32 %v361_v43, %v359_v45  ;;  %v1479_v45 = vld [vmem:[%s1982_s2 + $0x48] sm:$0xff]  }
 0x168   :  { %v351_v51 = vadd.f32 %v350_v47, %v349_v44  ;;  %v363_v52 = vrot.slane %v362_v49, 4  ;;  %v1478_v44 = vld [vmem:[%s1982_s2] sm:$0xff]  }
 0x16a   :  { %v352_v53 = vrot.slane %v351_v51, 2  ;;  %v364_v54 = vadd.f32 %v363_v52, %v362_v49  ;;  %v1481_v49 = vld [vmem:[%s1982_s2 + $0x8] sm:$0xff]   ;;  %v1483_v52 = vld [vmem:[%s1982_s2 + $0x98] sm:$0xff]  }
 0x16b   :  { %1332 = vmatprep.subr.bf16.mxu0 %v1483_v52 }
 0x16c   :  { %v353_v55 = vadd.f32 %v352_v53, %v351_v51  ;;  %v365_v56 = vrot.slane %v364_v54, 2  ;;  %v1482_v51 = vld [vmem:[%s1982_s2 + $0x50] sm:$0xff]   ;;  %1333 = vmatpush3.bf16.msra.mxu0 %v1483_v52 }
 0x16d   :  { %v1484_v53 = vld [vmem:[%s1982_s2 + $0x10] sm:$0xff]  }
 0x16e   :  { %v354_v57 = vrot.slane %v353_v55, 1  ;;  %v366_v58 = vadd.f32 %v365_v56, %v364_v54  ;;  %v1485_v54 = vld [vmem:[%s1982_s2 + $0x58] sm:$0xff]  }
 0x16f   :  { %v1487_v56 = vld [vmem:[%s1982_s2 + $0x18] sm:$0xff]  }
 0x170   :  { %v367_v59 = vrot.slane %v366_v58, 1  ;;  %v355_v60 = vadd.f32 %v354_v57, %v353_v55  ;;  %v1486_v55 = vld [vmem:[%s1982_s2 + $0xa0] sm:$0xff]  }
 0x171   :  { %1334 = vmatprep.subr.bf16.mxu0 %v1486_v55  ;;  %v1488_v57 = vld [vmem:[%s1982_s2 + $0x60] sm:$0xff]  }
 0x172   :  { %v368_v61 = vadd.f32 %v367_v59, %v366_v58  ;;  %1335 = vmatpush3.bf16.msra.mxu0 %v1486_v55  ;;  %v1489_v58 = vld [vmem:[%s1982_s2 + $0xa8] sm:$0xff]   ;;  %v1490_v59 = vld [vmem:[%s1982_s2 + $0x20] sm:$0xff]  }
 0x173   :  { %1336 = vmatprep.subr.bf16.mxu0 %v1489_v58 }
 0x174   :  { %v370_v62 = vsel %vm60_vm1, %v355_v60, %v368_v61  ;;  %v1491_v60 = vld [vmem:[%s1982_s2 + $0x68] sm:$0xff]   ;;  %v1492_v61 = vld [vmem:[%s1982_s2 + $0xb0] sm:$0xff]  }
 0x175   :  { %1319 = vmatmul.mubr.f32.vlgmr.msra.gmra.mrb[0].mxu1 %v370_v62  ;;  %v1493_v62 = vld [vmem:[%s1982_s2 + $0x28] sm:$0xff]  }
 0x176   :  { %1323 = vmatprep.mubr.msk.f32.mxu1 %vm1505_vm6, %v1506_v28  ;;  %1322 = vmatpush3.msra.mxu1 %v1802_v63 }
 0x177   :  { %1229 = vmatprep.subr.bf16.mxu1 %v1476_v1  ;;  %1337 = vmatpush3.bf16.msra.mxu0 %v1489_v58  ;;  %v1495_v1 = vld [vmem:[%s1982_s2 + $0xb8] sm:$0xff]  }
 0x178   :  { %1338 = vmatprep.subr.bf16.mxu0 %v1492_v61 }
 0x17b   :  { %1339 = vmatpush3.bf16.msra.mxu0 %v1492_v61 }
 0x17c   :  { %1340 = vmatprep.subr.bf16.mxu0 %v1495_v1 }
 0x17f   :  { %1341 = vmatpush3.bf16.msra.mxu0 %v1495_v1 }
 0x180   :  { %1381 = vmatprep.subr.mxu0 %v1506_v28 }
 0x248   :  { %v437_v4 = vpop.f32.mrb[0].mxu1 }
 0x249   :  { %v441_v5 = vmul.f32 0.001953125, %v437_v4  ;;  %v1320_v6 = vpop.f32.mrb[1].mxu1  ;;  %v1498_v4 = vld [vmem:[%s1982_s2 + $0x38] sm:$0xff]  }
 0x24b   :  { %v442_v7 = vmul.f32 %v441_v5, %v441_v5 }
 0x24d   :  { %v444_v8 = vrot.slane %v442_v7, 7 }
 0x24f   :  { %v446_v10 = vsub.f32 %v441_v5, %v444_v8 }
 0x251   :  { %v447_v11 = vadd.f32 1e-05, %v446_v10 }
 0x253   :  { %1499 = vrsqrt.f32 %v447_v11 }
 0x25d   :  { %v1500_v23 = vpop.eup %1499 }
 0x25e   :  { %v456_v24 = vrot.slane %v1500_v23, %v1820_v21 }
 0x260   :  { %v457_v26 = vcombine.high %v456_v24, %v456_v24 }
 0x262   :  { %v464_v33 = vrot.slane %v457_v26, %v1820_v21 }
 0x264   :  { %v466_v34 = vmul.f32 %v464_v33, %v328_v27 }
 0x266   :  { %v467_v37 = vmul.f32 %v466_v34, %v441_v5  ;;  %v560_v5 = vsub.s32 1, %v1817_v20 }
 0x268   :  { %v468_v40 = vsub.f32 %v329_v35, %v467_v37 }
 0x26a   :  { %v473_v43 = vrot.slane %v468_v40, %v1831_v39 }
 0x26c   :  { %v475_v47 = vsel %vm60_vm1, %v466_v34, %v473_v43 }
 0x26d   :  { %1324 = vmatmul.mubr.msk.f32.vlgmr.msra.gmra.mrb[2].mxu1 %vm476_vm7, %v475_v47 }
 0x26e   :  { %1230 = vmatpush3.bf16.msra.mxu1 %v1478_v44 }
 0x26f   :  { %1231 = vmatprep.subr.bf16.mxu1 %v1479_v45 }
 0x272   :  { %1232 = vmatpush3.bf16.msra.mxu1 %v1481_v49 }
 0x273   :  { %1233 = vmatprep.subr.bf16.mxu1 %v1482_v51 }
 0x276   :  { %1234 = vmatpush3.bf16.msra.mxu1 %v1484_v53 }
 0x277   :  { %1235 = vmatprep.subr.bf16.mxu1 %v1485_v54 }
 0x27a   :  { %1236 = vmatpush3.bf16.msra.mxu1 %v1487_v56 }
 0x27b   :  { %1237 = vmatprep.subr.bf16.mxu1 %v1488_v57 }
 0x27e   :  { %1238 = vmatpush3.bf16.msra.mxu1 %v1490_v59 }
 0x27f   :  { %1239 = vmatprep.subr.bf16.mxu1 %v1491_v60 }
 0x282   :  { %1240 = vmatpush3.bf16.msra.mxu1 %v1493_v62 }
 0x283   :  { %1241 = vmatprep.subr.bf16.mxu1 %v1494_v0 }
 0x286   :  { %1242 = vmatpush3.bf16.msra.mxu1 %v1496_v2 }
 0x287   :  { %1243 = vmatprep.subr.bf16.mxu1 %v1497_v3 }
 0x28a   :  { %1244 = vmatpush3.bf16.msra.mxu1 %v1498_v4 }
 0x28b   :  { %1410 = vmatprep.subr.bf16.mxu1 %v1504_v48 }
 0x340   :  { %v546_v6 = vpop.f32.mrb[2].mxu1 }
 0x341   :  { %v553_v7 = vrot.slane %v546_v6, %v1831_v39  ;;  %v1325_v8 = vpop.f32.mrb[3].mxu1  ;;  %v561_v10 = vrot.slane %v546_v6, %v560_v5 }
 0x343   :  { %v554_v11 = vmul.f32 %v553_v7, %v1768_v30  ;;  %v555_v13 = vmul.f32 %v553_v7, %v1772_v32  ;;  %v556_v14 = vmul.f32 %v553_v7, %v1782_v38  ;;  %v557_v17 = vmul.f32 %v553_v7, %v1789_v42 }
 0x345   :  { %v562_v18 = vadd.f32 %v561_v10, %v554_v11  ;;  %v563_v23 = vadd.f32 %v561_v10, %v555_v13  ;;  %v564_v24 = vadd.f32 %v561_v10, %v556_v14  ;;  %v565_v26 = vadd.f32 %v561_v10, %v557_v17 }
 0x347   :  { %v566_v27 = vmax.f32 %v562_v18, 0.0  ;;  %v567_v33 = vmax.f32 %v563_v23, 0.0  ;;  %v568_v34 = vmax.f32 %v564_v24, 0.0  ;;  %v569_v35 = vmax.f32 %v565_v26, 0.0 }
 0x349   :  { %v571_v37 = vpack.c.bf16 %v569_v35, %v568_v34  ;;  %v570_v40 = vpack.c.bf16 %v567_v33, %v566_v27 }
 0x34b   :  { %v573_v43 = vshrl.u32 %v570_v40, 16  ;;  %v580_v44 = vshrl.u32 %v571_v37, 16  ;;  %v583_v45 = vshll.u32 %v571_v37, 16  ;;  %v576_v47 = vshll.u32 %v570_v40, 16 }
 0x34d   :  { %v575_v30 = vrot.slane %v573_v43, 7  ;;  %v582_v32 = vrot.slane %v580_v44, 7 }
 0x34f   :  { %v578_v49 = vor.u32 %v576_v47, %v575_v30  ;;  %v592_v38 = vsel %vm1589_vm2, %v575_v30, 0  ;;  %v585_v42 = vor.u32 %v583_v45, %v582_v32  ;;  %v593_v51 = vsel %vm1589_vm2, %v582_v32, 0 }
 0x350   :  { %v625_v53 = vrot.slane %v592_v38, 1  ;;  %v628_v55 = vrot.slane %v593_v51, 1  ;;  %v602_v59 = vshll.u32 %v592_v38, 16  ;;  %v614_v61 = vshll.u32 %v593_v51, 16 }
 0x351   :  { %v590_v52 = vsel %vm1589_vm2, 0, %v578_v49  ;;  %v591_v54 = vsel %vm1589_vm2, 0, %v585_v42 }
 0x352   :  { %v624_v56 = vrot.slane %v590_v52, 1  ;;  %v627_v57 = vrot.slane %v591_v54, 1  ;;  %v597_v58 = vshll.u32 %v590_v52, 16  ;;  %v609_v60 = vshll.u32 %v591_v54, 16 }
 0x353   :  { %v595_v1 = vshrl.u32 %v590_v52, 16  ;;  %v607_v3 = vshrl.u32 %v591_v54, 16  ;;  %v604_v15 = vrot.slane %v602_v59, 1  ;;  %v616_v10 = vrot.slane %v614_v61, 1 }
 0x354   :  { %v626_v62 = vsel %vm100_vm4, %v624_v56, %v625_v53  ;;  %v629_v0 = vsel %vm100_vm4, %v627_v57, %v628_v55  ;;  %v599_v2 = vrot.slane %v597_v58, 1  ;;  %v611_v4 = vrot.slane %v609_v60, 1 }
 0x355   :  { %1342 = vmatprep.mubr.bf16.mxu0 %v626_v62 }
 0x356   :  { %1343 = vmatmul.mubr.bf16.vlgmr.msra.gmra.mrb[8].mxu0 %v629_v0  ;;  %v600_v6 = vor.u32 %v599_v2, %v595_v1  ;;  %v612_v7 = vor.u32 %v611_v4, %v607_v3 }
 0x357   :  { %1382 = vmatpush3.msra.mxu0 %v1802_v63  ;;  %1383 = vmatprep.mubr.msk.f32.mxu0 %vm1505_vm6, %v1506_v28 }
 0x358   :  { %v605_v8 = vsel %vm67_vm3, %v600_v6, %v604_v15  ;;  %v617_v11 = vsel %vm67_vm3, %v612_v7, %v616_v10 }
 0x359   :  { %856 = vmatprep.mubr.bf16.mxu1 %v605_v8  ;;  %v922_v8 = vld [vmem:[%s1985_s5] sm:$0x1] }
 0x35a   :  { %857 = vmatmul.mubr.bf16.vlgmr.msra.gmra.mrb[4].mxu1 %v590_v52 }
 0x35b   :  { %864 = vmatprep.mubr.bf16.mxu1 %v617_v11  ;;  %1412 = vmatpush3.bf16.msra.mxu1 %v1645_v50 }
 0x35c   :  { %1413 = vmatprep.subr.bf16.mxu1 %v1504_v48 }
 0x35f   :  { %1415 = vmatpush3.bf16.msra.mxu1 %v1702_v9 }
 0x360   :  { %1416 = vmatprep.subr.bf16.mxu1 %v1504_v48 }
 0x362   :  { %865 = vmatmul.mubr.bf16.gmra.mrb[8].mxu1 %v591_v54 }
 0x363   :  { %1418 = vmatpush3.bf16.msra.mxu1 %v1712_v12  ;;  %1378 = vmatprep.mubr.msk.f32.mxu1 %vm1505_vm6, %v1506_v28 }
 0x364   :  { %1419 = vmatprep.subr.bf16.mxu1 %v1504_v48 }
 0x367   :  { %1421 = vmatpush3.bf16.msra.mxu1 %v1722_v16 }
 0x368   :  { %1422 = vmatprep.subr.bf16.mxu1 %v1504_v48 }
 0x36b   :  { %1424 = vmatpush3.bf16.msra.mxu1 %v1732_v19 }
 0x36c   :  { %1425 = vmatprep.subr.bf16.mxu1 %v1504_v48 }
 0x36f   :  { %1427 = vmatpush3.bf16.msra.mxu1 %v1742_v22 }
 0x370   :  { %1428 = vmatprep.subr.bf16.mxu1 %v1504_v48 }
 0x373   :  { %1430 = vmatpush3.bf16.msra.mxu1 %v1752_v25 }
 0x374   :  { %1431 = vmatprep.subr.bf16.mxu1 %v1504_v48 }
 0x377   :  { %1433 = vmatpush3.bf16.msra.mxu1 %v1763_v29 }
 0x429   :  { %v1344_v50 = vpop.f32.mrb[8].mxu0 }
 0x42a   :  { %v907_v9 = vpop.f32.mrb[9].mxu0 }
 0x42b   :  { %v1345_v12 = vpop.f32.mrb[10].mxu0 }
 0x42c   :  { %v910_v16 = vpop.f32.mrb[11].mxu0 }
 0x42d   :  { %v1245_v28 = vpop.f32.mrb[4].mxu1 }
 0x42e   :  { %v1246_v63 = vpop.f32.mrb[5].mxu1 }
 0x42f   :  { %v1247_v13 = vadd.f32 %v1246_v63, %v1245_v28  ;;  %v1248_v19 = vpop.f32.mrb[6].mxu1 }
 0x430   :  { %v1249_v14 = vpop.f32.mrb[7].mxu1 }
 0x431   :  { %v1938_v17 = vadd.f32 %v1247_v13, %v907_v9  ;;  %v1250_v22 = vadd.f32 %v1249_v14, %v1248_v19  ;;  %v1183_v13 = vld [vmem:[%s1987_s9] ss:$0 sm:$0xff] }
 0x433   :  { %v911_v18 = vadd.f32 %v1250_v22, %v910_v16  ;;  %v933_v29 = vmul.f32 %v1938_v17, %v1938_v17 }
 0x435   :  { %v1251_v23 = vpop.f32.mrb[8].mxu1  ;;  %v934_v25 = vmul.f32 %v911_v18, %v911_v18  ;;  %v924_v33 = vadd.f32 %v911_v18, %v1938_v17 }
 0x436   :  { %v1252_v24 = vpop.f32.mrb[9].mxu1 }
 0x437   :  { %v1253_v26 = vadd.f32 %v1252_v24, %v1251_v23  ;;  %v1254_v48 = vpop.f32.mrb[10].mxu1  ;;  %v937_v37 = vadd.f32 %v934_v25, %v933_v29  ;;  %v327_v29 = vadd.f32 %v1183_v13, %v1794_v46 }
 0x438   :  { %v1255_v27 = vpop.f32.mrb[11].mxu1 }
 0x439   :  { %v916_v34 = vadd.f32 %v1344_v50, %v1253_v26  ;;  %v1256_v35 = vadd.f32 %v1255_v27, %v1254_v48  ;;  %v923_v50 = vld [vmem:[%s1986_s6] sm:$0x1]  ;;  %v324_v26 = vadd.f32 %v1183_v13, %v1770_v31  ;;  %v325_v48 = vadd.f32 %v1183_v13, %v1780_v36 }
 0x43a   :  { %v326_v27 = vadd.f32 %v1183_v13, %v1787_v41 }
 0x43b   :  { %v925_v40 = vadd.f32 %v924_v33, %v916_v34  ;;  %v935_v43 = vmul.f32 %v916_v34, %v916_v34  ;;  %v919_v44 = vadd.f32 %v1345_v12, %v1256_v35 }
 0x43d   :  { %v938_v45 = vadd.f32 %v937_v37, %v935_v43  ;;  %v926_v30 = vadd.f32 %v925_v40, %v919_v44  ;;  %v936_v47 = vmul.f32 %v919_v44, %v919_v44 }
 0x43f   :  { %v927_v32 = vrot.slane %v926_v30, 4  ;;  %v939_v49 = vadd.f32 %v938_v45, %v936_v47 }
 0x441   :  { %v928_v38 = vadd.f32 %v927_v32, %v926_v30  ;;  %v940_v42 = vrot.slane %v939_v49, 4 }
 0x443   :  { %v929_v51 = vrot.slane %v928_v38, 2  ;;  %v941_v52 = vadd.f32 %v940_v42, %v939_v49 }
 0x445   :  { %v930_v53 = vadd.f32 %v929_v51, %v928_v38  ;;  %v942_v54 = vrot.slane %v941_v52, 2 }
 0x447   :  { %v931_v55 = vrot.slane %v930_v53, 1  ;;  %v943_v56 = vadd.f32 %v942_v54, %v941_v52 }
 0x449   :  { %v944_v57 = vrot.slane %v943_v56, 1  ;;  %v932_v58 = vadd.f32 %v931_v55, %v930_v53 }
 0x44b   :  { %v945_v59 = vadd.f32 %v944_v57, %v943_v56 }
 0x44d   :  { %v946_v60 = vsel %vm60_vm1, %v932_v58, %v945_v59 }
 0x44e   :  { %1379 = vmatmul.mubr.f32.vlgmr.msra.gmra.mrb[12].mxu1 %v946_v60 }
 0x521   :  { %v1013_v61 = vpop.f32.mrb[12].mxu1 }
 0x522   :  { %v1017_v62 = vmul.f32 0.001953125, %v1013_v61  ;;  %v1380_v0 = vpop.f32.mrb[13].mxu1 }
 0x524   :  { %v1018_v1 = vmul.f32 %v1017_v62, %v1017_v62 }
 0x526   :  { %v1020_v2 = vrot.slane %v1018_v1, 7 }
 0x528   :  { %v1022_v3 = vsub.f32 %v1017_v62, %v1020_v2 }
 0x52a   :  { %v1023_v4 = vadd.f32 1e-05, %v1022_v3 }
 0x52c   :  { %1501 = vrsqrt.f32 %v1023_v4 }
 0x536   :  { %v1502_v6 = vpop.eup %1501 }
 0x537   :  { %v1032_v15 = vrot.slane %v1502_v6, %v1820_v21 }
 0x539   :  { %v1033_v7 = vcombine.high %v1032_v15, %v1032_v15 }
 0x53b   :  { %v1040_v10 = vrot.slane %v1033_v7, %v1820_v21 }
 0x53d   :  { %v1042_v11 = vmul.f32 %v1040_v10, %v922_v8 }
 0x53f   :  { %v1043_v9 = vmul.f32 %v1042_v11, %v1017_v62 }
 0x541   :  { %v1044_v12 = vsub.f32 %v923_v50, %v1043_v9 }
 0x543   :  { %v1049_v16 = vrot.slane %v1044_v12, %v1831_v39 }
 0x545   :  { %v1051_v28 = vsel %vm60_vm1, %v1042_v11, %v1049_v16 }
 0x546   :  { %1384 = vmatmul.mubr.msk.f32.vlgmr.msra.gmra.mrb[12].mxu0 %vm476_vm7, %v1051_v28 }
 0x619   :  { %v1121_v63 = vpop.f32.mrb[12].mxu0 }
 0x61a   :  { %v1128_v21 = vrot.slane %v1121_v63, %v1831_v39  ;;  %v1385_v19 = vpop.f32.mrb[13].mxu0  ;;  %v1136_v14 = vrot.slane %v1121_v63, %v560_v5 }
 0x61c   :  { %v1129_v22 = vmul.f32 %v1128_v21, %v1938_v17  ;;  %v1130_v23 = vmul.f32 %v1128_v21, %v911_v18  ;;  %v1131_v24 = vmul.f32 %v1128_v21, %v916_v34  ;;  %v1132_v25 = vmul.f32 %v1128_v21, %v919_v44 }
 0x61e   :  { %v1137_v33 = vadd.f32 %v1136_v14, %v1129_v22  ;;  %v1138_v35 = vadd.f32 %v1136_v14, %v1130_v23  ;;  %v1139_v39 = vadd.f32 %v1136_v14, %v1131_v24  ;;  %v1140_v37 = vadd.f32 %v1136_v14, %v1132_v25 }
 0x620   :  { %v1141_v40 = vadd.f32 %v1137_v33, %v324_v26  ;;  %v1142_v20 = vadd.f32 %v1138_v35, %v325_v48  ;;  %v1143_v5 = vadd.f32 %v1139_v39, %v326_v27  ;;  %v1144_v43 = vadd.f32 %v1140_v37, %v327_v29 }
 0x622   :  { %v1145_v17 = vmax.f32 %v1141_v40, 0.0  ;;  %v1146_v18 = vmax.f32 %v1142_v20, 0.0  ;;  %v1147_v34 = vmax.f32 %v1143_v5, 0.0  ;;  %v1148_v44 = vmax.f32 %v1144_v43, 0.0 }
 0x624   :  { %1149 = vst [vmem:[%s1988_s10] sm:$0xff] %v1145_v17  ;;  %1150 = vst [vmem:[%s1988_s10 + $0x8] sm:$0xff] %v1146_v18 }
 0x625   :  { %1151 = vst [vmem:[%s1988_s10 + $0x10] sm:$0xff] %v1147_v34  ;;  %1152 = vst [vmem:[%s1988_s10 + $0x18] sm:$0xff] %v1148_v44 }

</bundles_post_ra>
